<compile_context>
chip_gen: v7x
topology: tpu7x:2x2x1
jax: 0.10.0
libtpu: 0.0.40
codegen_flags: <defaults>
</compile_context>

<pallas_src>
import functools
import math

import jax
import jax.numpy as jnp
from jax.experimental import pallas as pl
from jax.experimental.pallas import tpu as pltpu


def _attention_kernel(x_ref, w_ref, b_ref, p_ref, o_ref, *, valid_t):
    x = x_ref[...]                                   # [Bb, Tp, H], stored dtype
    Bb, Tp, H = x.shape

    # One (Bb*Tp, H) @ (H, H) MXU matmul per grid step in the stored dtype
    # (bf16 x bf16 -> f32 is the native MXU path), f32 accumulation.
    # Tp is sublane-aligned (host-padded), so both reshapes are free.
    squish = jnp.tanh(
        jnp.dot(x.reshape(Bb * Tp, H), w_ref[...],
                preferred_element_type=jnp.float32)
        + b_ref[...])                                # [Bb*Tp, H] f32
    squish = squish.reshape(Bb, Tp, H)

    # Projection: VPU multiply + lane (XLU) reduce; proj already carries
    # the 1/scale factor (folded on the host).
    logits = jnp.sum(squish * p_ref[...], axis=-1)   # [Bb, Tp] f32

    if valid_t != Tp:  # static: only when T was padded on the host
        t_idx = jax.lax.broadcasted_iota(jnp.int32, (Bb, Tp), 1)
        logits = jnp.where(t_idx < valid_t, logits, -1e30)

    # Softmax over the time axis, lane-wise on [Bb, Tp] (equivalent to the
    # torch softmax(dim=0) on the time-first [T, B] tensor).
    m = jnp.max(logits, axis=-1, keepdims=True)
    e = jnp.exp(logits - m)
    attn = e * pl.reciprocal(jnp.sum(e, axis=-1, keepdims=True), approx=True)

    # Pool over time on the VPU/XLU (no M=1 MXU matmul); f32 accumulation.
    out = jnp.sum(x * attn[:, :, None], axis=1)      # [Bb, H] f32
    o_ref[...] = out.astype(o_ref.dtype)
    # TODO(synk): mask / hidden_states branches of forward() (default None) and
    # the host-side attention_std() numpy statistic are not implemented.


def _tpu_vmem_budget():
    """Returns (vmem_limit_bytes, two_tensorcores) — generation-aware."""
    cap = 128 << 20
    try:
        info = pltpu.get_tpu_info()
        cap = int(getattr(info, "vmem_capacity_bytes", cap))
    except Exception:
        pass
    if not cap or cap < (16 << 20):
        cap = 64 << 20
    limit = (cap * 3) // 4          # ~96 MiB on v5e/v6e, ~48 MiB on v7x
    two_tc = cap <= (64 << 20)      # v7x: 64 MiB VMEM per TC, 2 TCs per chip
    return limit, two_tc


def _choose_batch_block(B, Tp, H, in_itemsize, out_itemsize, *, budget, two_tc):
    """Pick how many batch elements to process per grid step."""
    out_align = {4: 8, 2: 16, 1: 32}.get(out_itemsize, 8)

    def fits(bb):
        # double-buffered input slab + 2 f32 intermediates (squish, pooled
        # product) + double-buffered resident weight + bias/proj + output.
        slab = bb * Tp * H * (2 * in_itemsize + 2 * 4)
        resident = 2 * H * H * in_itemsize + 4 * H * 4
        outb = 2 * bb * H * out_itemsize
        return slab + resident + outb <= budget

    if fits(B):
        if two_tc:
            half = B // 2
            if (B % 2 == 0 and half % out_align == 0 and half * Tp >= 256
                    and fits(half)):
                return half          # 2 steps -> shard across v7x's 2 TCs
        return B                     # 1 TC: single big step is cheapest
    cands = [bb for bb in range(B - 1, 0, -1)
             if B % bb == 0 and bb % out_align == 0 and fits(bb)]
    if two_tc:
        even = [bb for bb in cands if (B // bb) % 2 == 0]
        if even:
            return even[0]           # even step count keeps both TCs busy
    if cands:
        return cands[0]
    raise ValueError(
        f"AttentionLayer kernel: no batch block of B={B} fits the VMEM budget "
        f"({budget} bytes) with T={Tp}, H={H}. "
        "TODO(synk): add T/H tiling for extreme shapes.")


def attention_layer(xes, weight, bias, proj, *, batch_block=None):
    """xes: [B, T, H]  ->  [B, H]   (matches PyTorch AttentionLayer.forward)."""
    B, T, H = xes.shape
    inv_scale = 1.0 / float(int(math.sqrt(H)))   # PyTorch: int(math.sqrt(hs))

    # Pad T once on the host to the input dtype's sublane tile so the
    # in-kernel reshapes are tile-aligned (no per-step relayout copies).
    sub = {4: 8, 2: 16, 1: 32}.get(xes.dtype.itemsize, 8)
    Tp = ((T + sub - 1) // sub) * sub
    x_in = xes if Tp == T else jnp.pad(xes, ((0, 0), (0, Tp - T), (0, 0)))

    # Resident operands: W in the streamed dtype (no per-step promotion);
    # bias and (proj * 1/scale) in f32 for the f32 epilogue.
    w_in = weight.astype(xes.dtype)
    b_in = bias.astype(jnp.float32).reshape(1, H)
    p_in = (proj.reshape(-1).astype(jnp.float32) * inv_scale).reshape(1, H)

    limit, two_tc = _tpu_vmem_budget()
    Bb = batch_block or _choose_batch_block(
        B, Tp, H, x_in.dtype.itemsize, xes.dtype.itemsize,
        budget=limit - (2 << 20), two_tc=two_tc)
    assert B % Bb == 0, (B, Bb)

    kernel = functools.partial(_attention_kernel, valid_t=T)
    out = pl.pallas_call(
        kernel,
        out_shape=jax.ShapeDtypeStruct((B, H), xes.dtype),
        grid_spec=pltpu.PrefetchScalarGridSpec(
            num_scalar_prefetch=0,
            grid=(B // Bb,),
            in_specs=[
                pl.BlockSpec((Bb, Tp, H), lambda b: (b, 0, 0)),  # streamed slab
                pl.BlockSpec((H, H), lambda b: (0, 0)),          # weight (resident)
                pl.BlockSpec((1, H), lambda b: (0, 0)),          # bias   (resident)
                pl.BlockSpec((1, H), lambda b: (0, 0)),          # proj * 1/scale
            ],
            out_specs=pl.BlockSpec((Bb, H), lambda b: (b, 0)),   # lane-dense out
        ),
        compiler_params=pltpu.CompilerParams(
            dimension_semantics=("parallel",),
            vmem_limit_bytes=limit,
        ),
    )(x_in, w_in, b_in, p_in)
    # TODO(synk): resident weight/bias/proj could be single-buffered via
    # pipeline_mode=pl.Buffered(1); kept default and budgeted at 2x instead.
    return out


def attention_layer_ref(xes, weight, bias, proj):
    """Pure-JAX reference mirroring the PyTorch forward (f32 math)."""
    B, T, H = xes.shape
    scale = float(int(math.sqrt(H)))
    x = xes.astype(jnp.float32)
    squish = jnp.tanh(jnp.einsum('bth,hk->btk', x, weight.astype(jnp.float32))
                      + bias.astype(jnp.float32)[None, None, :])
    attn = jnp.einsum('bth,h->bt', squish,
                      proj.reshape(-1).astype(jnp.float32)) / scale
    attn_norm = jax.nn.softmax(attn, axis=1)   # softmax over time per batch
    return jnp.sum(x * attn_norm[:, :, None], axis=1)


if __name__ == "__main__":
    H = 32   # key_size
    key = jax.random.PRNGKey(0)
    kx, kw, kp = jax.random.split(key, 3)

    # Parameter init matching the module's __init__:
    #   weight, proj ~ U(-0.1, 0.1); bias = 0
    weight = jax.random.uniform(kw, (H, H), minval=-0.1, maxval=0.1,
                                dtype=jnp.float32)
    proj = jax.random.uniform(kp, (H, 1), minval=-0.1, maxval=0.1,
                              dtype=jnp.float32)
    bias = jnp.zeros((H,), dtype=jnp.float32)

    # EUP approx reciprocal in the softmax denominator -> compare at 2e-3.
    tol = dict(atol=2e-3, rtol=2e-3)

    # 1) Small single-step case.
    B, T = 2, 8
    xes = jax.random.normal(kx, (B, T, H), dtype=jnp.float32)
    out = jax.block_until_ready(attention_layer(xes, weight, bias, proj))
    ref = attention_layer_ref(xes, weight, bias, proj)
    assert out.shape == (B, H)
    assert jnp.allclose(out, ref.astype(out.dtype), **tol)

    # 2) Multi-step grid with sublane-aligned (Bb, H) output blocks.
    B2, T2 = 16, 8
    xes2 = jax.random.normal(jax.random.fold_in(kx, 1), (B2, T2, H),
                             dtype=jnp.float32)
    out2 = jax.block_until_ready(
        attention_layer(xes2, weight, bias, proj, batch_block=8))
    ref2 = attention_layer_ref(xes2, weight, bias, proj)
    assert out2.shape == (B2, H)
    assert jnp.allclose(out2, ref2.astype(out2.dtype), **tol)

    # 3) T not a sublane multiple -> host pad + in-kernel time mask.
    B3, T3 = 8, 10
    xes3 = jax.random.normal(jax.random.fold_in(kx, 2), (B3, T3, H),
                             dtype=jnp.float32)
    out3 = jax.block_until_ready(attention_layer(xes3, weight, bias, proj))
    ref3 = attention_layer_ref(xes3, weight, bias, proj)
    assert out3.shape == (B3, H)
    assert jnp.allclose(out3, ref3.astype(out3.dtype), **tol)

    # 4) bf16 streamed slab: native bf16 MXU path (weights cast once on host).
    B4, T4 = 4, 8
    xes4 = jax.random.normal(jax.random.fold_in(kx, 3), (B4, T4, H),
                             dtype=jnp.float32).astype(jnp.bfloat16)
    out4 = jax.block_until_ready(attention_layer(xes4, weight, bias, proj))
    ref4 = attention_layer_ref(xes4.astype(jnp.float32), weight, bias, proj)
    assert out4.shape == (B4, H) and out4.dtype == jnp.bfloat16
    assert jnp.allclose(out4.astype(jnp.float32), ref4, atol=3e-2, rtol=3e-2)

    print("KERNEL_OK")
</pallas_src>

<mosaic_0001>
module attributes {stable_mosaic.version = 11 : i64} {
  func.func @_attention_kernel(%arg0: i32, %arg1: memref<2x8x32xf32, #tpu.memory_space<vmem>>, %arg2: memref<32x32xf32, #tpu.memory_space<vmem>>, %arg3: memref<1x32xf32, #tpu.memory_space<vmem>>, %arg4: memref<1x32xf32, #tpu.memory_space<vmem>>, %arg5: memref<2x32xf32, #tpu.memory_space<vmem>>) attributes {dimension_semantics = [#tpu.dimension_semantics<parallel>], iteration_bounds = array<i64: 1>, scalar_prefetch = 0 : i64, scratch_operands = 0 : i64, tpu.core_type = #tpu.core_type<tc>, window_params = [{transform_indices = @transform_0, window_bounds = array<i64: 2, 8, 32>}, {pipeline_mode = #tpu.pipeline_mode<synchronous>, transform_indices = @transform_1, window_bounds = array<i64: 32, 32>}, {pipeline_mode = #tpu.pipeline_mode<synchronous>, transform_indices = @transform_2, window_bounds = array<i64: 1, 32>}, {pipeline_mode = #tpu.pipeline_mode<synchronous>, transform_indices = @transform_3, window_bounds = array<i64: 1, 32>}, {transform_indices = @transform_4, window_bounds = array<i64: 2, 32>}]} {
    %c0 = arith.constant 0 : index
    %c0_0 = arith.constant 0 : index
    %c0_1 = arith.constant 0 : index
    %0 = vector.load %arg1[%c0, %c0_0, %c0_1] : memref<2x8x32xf32, #tpu.memory_space<vmem>>, vector<2x8x32xf32>
    %1 = vector.shape_cast %0 : vector<2x8x32xf32> to vector<16x32xf32>
    %c0_2 = arith.constant 0 : index
    %c0_3 = arith.constant 0 : index
    %2 = vector.load %arg2[%c0_2, %c0_3] : memref<32x32xf32, #tpu.memory_space<vmem>>, vector<32x32xf32>
    %cst = arith.constant dense<0.000000e+00> : vector<16x32xf32>
    %3 = tpu.matmul %1, %2, %cst {dimension_numbers = #tpu.dot_dimension_numbers<[1], [0], [0], [1], [0, 0, 1, 1], [], []>} : vector<16x32xf32>, vector<32x32xf32>, vector<16x32xf32> -> vector<16x32xf32>
    %c0_4 = arith.constant 0 : index
    %c0_5 = arith.constant 0 : index
    %4 = vector.load %arg3[%c0_4, %c0_5] : memref<1x32xf32, #tpu.memory_space<vmem>>, vector<1x32xf32>
    %5 = vector.broadcast %4 : vector<1x32xf32> to vector<16x32xf32>
    %6 = arith.addf %3, %5 : vector<16x32xf32>
    %7 = math.tanh %6 : vector<16x32xf32>
    %8 = vector.shape_cast %7 : vector<16x32xf32> to vector<2x8x32xf32>
    %c0_6 = arith.constant 0 : index
    %c0_7 = arith.constant 0 : index
    %9 = vector.load %arg4[%c0_6, %c0_7] : memref<1x32xf32, #tpu.memory_space<vmem>>, vector<1x32xf32>
    %10 = vector.shape_cast %9 : vector<1x32xf32> to vector<1x1x32xf32>
    %11 = vector.broadcast %10 : vector<1x1x32xf32> to vector<2x8x32xf32>
    %12 = arith.mulf %8, %11 : vector<2x8x32xf32>
    %cst_8 = arith.constant dense<0.000000e+00> : vector<2x8xf32>
    %13 = vector.multi_reduction <add>, %12, %cst_8 [2] : vector<2x8x32xf32> to vector<2x8xf32>
    %cst_9 = arith.constant dense<0xFF800000> : vector<2xf32>
    %14 = vector.multi_reduction <maximumf>, %13, %cst_9 [1] : vector<2x8xf32> to vector<2xf32>
    %15 = vector.shape_cast %14 : vector<2xf32> to vector<2x1xf32>
    %16 = vector.broadcast %15 : vector<2x1xf32> to vector<2x8xf32>
    %17 = arith.subf %13, %16 : vector<2x8xf32>
    %18 = math.exp %17 : vector<2x8xf32>
    %cst_10 = arith.constant dense<0.000000e+00> : vector<2xf32>
    %19 = vector.multi_reduction <add>, %18, %cst_10 [1] : vector<2x8xf32> to vector<2xf32>
    %20 = vector.shape_cast %19 : vector<2xf32> to vector<2x1xf32>
    %21 = tpu.reciprocal %20 {approx = true} : vector<2x1xf32> -> vector<2x1xf32>
    %22 = vector.broadcast %21 : vector<2x1xf32> to vector<2x8xf32>
    %23 = arith.mulf %18, %22 : vector<2x8xf32>
    %24 = vector.shape_cast %23 : vector<2x8xf32> to vector<2x8x1xf32>
    %25 = vector.broadcast %24 : vector<2x8x1xf32> to vector<2x8x32xf32>
    %26 = arith.mulf %0, %25 : vector<2x8x32xf32>
    %cst_11 = arith.constant dense<0.000000e+00> : vector<2x32xf32>
    %27 = vector.multi_reduction <add>, %26, %cst_11 [1] : vector<2x8x32xf32> to vector<2x32xf32>
    %c0_12 = arith.constant 0 : index
    %c0_13 = arith.constant 0 : index
    %28 = vector.load %arg5[%c0_12, %c0_13] : memref<2x32xf32, #tpu.memory_space<vmem>>, vector<2x32xf32>
    tpu.vector_store %arg5[%c0_12, %c0_13], %27 {strides = array<i32>} : memref<2x32xf32, #tpu.memory_space<vmem>>, vector<2x32xf32>,
    return
  }
  func.func @transform_0(%arg0: i32) -> (i32, i32, i32) {
    %c0_i32 = arith.constant 0 : i32
    %c0_i32_0 = arith.constant 0 : i32
    %c0_i32_1 = arith.constant 0 : i32
    return %arg0, %c0_i32, %c0_i32_0 : i32, i32, i32
  }
  func.func @transform_1(%arg0: i32) -> (i32, i32) {
    %c0_i32 = arith.constant 0 : i32
    %c0_i32_0 = arith.constant 0 : i32
    %c0_i32_1 = arith.constant 0 : i32
    return %c0_i32, %c0_i32_0 : i32, i32
  }
  func.func @transform_2(%arg0: i32) -> (i32, i32) {
    %c0_i32 = arith.constant 0 : i32
    %c0_i32_0 = arith.constant 0 : i32
    %c0_i32_1 = arith.constant 0 : i32
    return %c0_i32, %c0_i32_0 : i32, i32
  }
  func.func @transform_3(%arg0: i32) -> (i32, i32) {
    %c0_i32 = arith.constant 0 : i32
    %c0_i32_0 = arith.constant 0 : i32
    %c0_i32_1 = arith.constant 0 : i32
    return %c0_i32, %c0_i32_0 : i32, i32
  }
  func.func @transform_4(%arg0: i32) -> (i32, i32) {
    %c0_i32 = arith.constant 0 : i32
    %c0_i32_0 = arith.constant 0 : i32
    return %arg0, %c0_i32 : i32, i32
  }
}

</mosaic_0001>

<bundles_post_ra>
// kernel: tpu_custom_call.1
= control target key start
LH: loop header
LB: loop body
LE: loop exit
PB: predicated region body
PF: predicated region fallthrough
CT: control target
= control target key end

     0   :  { %9 = vsyncpa [#allocation3], 0  ;;  %s587_s0 = inlined_call_operand.hbm [shape: f32[2,8,32], index: 0, kind: input, shape index: {}]   ;;  %s588_s1 = inlined_call_operand.hbm [shape: f32[32,32], index: 1, kind: input, shape index: {}]   ;;  %s589_s2 = inlined_call_operand.hbm [shape: f32[1,32], index: 2, kind: input, shape index: {}]   ;;  %s590_s3 = inlined_call_operand.hbm [shape: f32[1,32], index: 3, kind: input, shape index: {}]   ;;  %s591_s4 = inlined_call_operand.hbm [shape: f32[2,32], index: 4, kind: output, shape index: {}]  }
   0x1   :  { %10 = vsyncpa [#allocation6], 0 }
   0x2   :  { %11 = vsyncpa [#allocation9], 0 }
   0x3   :  { %12 = vsyncpa [#allocation4], 0  ;;  %s468_s15 = smov [#allocation5]   ;;  %s469_s17 = smov [#allocation2]  }
   0x4   :  { %s30_s16 = sshll.u32 %s468_s15, 4  ;;  %s18_s18 = sshll.u32 %s469_s17, 4  ;;  %s31_s16 = int_to_ptr.vmem [resolvable:$true] %s30_s16  ;;  %s501_s18 = int_to_ptr.vmem [resolvable:$true] %s18_s18 }
   0x5   :  { %s350_s21 = scalar_lea.hbm %s588_s1, 512 }
   0x6   :  { %p351_p0 = scmp.ne.s32.totalorder %s588_s1, %s350_s21  ;;  %p354_p1 = scmp.lt.u32.totalorder %s350_s21, %s588_s1 }
   0x8   :  { %p356_p2 = pnand %p354_p1, %p351_p0 }
   0xa   :  { %359 = shalt.err (!%p356_p2)
}
   0xb   :  { %s360_s26 = scalar_lea.vmem %s31_s16, 512  ;;  %p365_p4 = scmp.lt.s32.totalorder %s31_s16, %s31_s16 }
   0xc   :  { %p361_p3 = scmp.ne.s32.totalorder %s31_s16, %s360_s26  ;;  %p366_p5 = scmp.lt.s32.totalorder %s360_s26, %s360_s26 }
   0xe   :  { %p367_p6 = por %p366_p5, %p365_p4 }
  0x10   :  { %p368_p7 = pnand %p367_p6, %p361_p3 }
  0x12   :  { %371 = shalt.err (!%p368_p7)
}
  0x13   :  { %s470_s27 = smov 128   ;;  %s471_s28 = smov 8  }
  0x14   :  { %36 = dma.hbm_to_vmem [thread:$0]  %s588_s1, 512, %s31_s16, [#allocation6], %s470_s27, %s470_s27, %s471_s28  }
  0x15   :  { %s372_s7 = scalar_lea.hbm %s587_s0, 256 }
  0x16   :  { %p373_p8 = scmp.ne.s32.totalorder %s587_s0, %s372_s7  ;;  %p376_p9 = scmp.lt.u32.totalorder %s372_s7, %s587_s0 }
  0x18   :  { %p378_p10 = pnand %p376_p9, %p373_p8 }
  0x1a   :  { %381 = shalt.err (!%p378_p10)
}
  0x1b   :  { %s382_s12 = scalar_lea.vmem %s501_s18, 256  ;;  %p387_p12 = scmp.lt.s32.totalorder %s501_s18, %s501_s18 }
  0x1c   :  { %p383_p11 = scmp.ne.s32.totalorder %s501_s18, %s382_s12  ;;  %p388_p13 = scmp.lt.s32.totalorder %s382_s12, %s382_s12 }
  0x1e   :  { %p389_p0 = por %p388_p13, %p387_p12 }
  0x20   :  { %p390_p1 = pnand %p389_p0, %p383_p11 }
  0x22   :  { %393 = shalt.err (!%p390_p1)
}
  0x23   :  { %24 = dma.hbm_to_vmem [thread:$0]  %s587_s0, 256, %s501_s18, [#allocation3], %s470_s27, %s470_s27, %s471_s28  }
  0x24   :  { %s472_s14 = smov [#allocation7]   ;;  %s473_s16 = smov [#allocation8]  }
  0x25   :  { %s43_s15 = sshll.u32 %s472_s14, 4  ;;  %s53_s17 = sshll.u32 %s473_s16, 4  ;;  %s44_s15 = int_to_ptr.vmem [resolvable:$true] %s43_s15  ;;  %s54_s17 = int_to_ptr.vmem [resolvable:$true] %s53_s17 }
  0x26   :  { %s394_s21 = scalar_lea.hbm %s589_s2, 16 }
  0x27   :  { %p395_p2 = scmp.ne.s32.totalorder %s589_s2, %s394_s21  ;;  %p398_p3 = scmp.lt.u32.totalorder %s394_s21, %s589_s2 }
  0x29   :  { %p400_p4 = pnand %p398_p3, %p395_p2 }
  0x2b   :  { %403 = shalt.err (!%p400_p4)
}
  0x2c   :  { %s404_s0 = scalar_lea.vmem %s44_s15, 16  ;;  %s408_s18 = scalar_lea.vmem %s44_s15, 32 }
  0x2d   :  { %p405_p5 = scmp.ne.s32.totalorder %s44_s15, %s404_s0  ;;  %p409_p6 = scmp.lt.s32.totalorder %s44_s15, %s44_s15 }
  0x2e   :  { %p410_p7 = scmp.lt.s32.totalorder %s408_s18, %s404_s0 }
  0x30   :  { %p411_p8 = por %p410_p7, %p409_p6 }
  0x32   :  { %p412_p9 = pnand %p411_p8, %p405_p5 }
  0x34   :  { %415 = shalt.err (!%p412_p9)
}
  0x35   :  { %46 = dma.hbm_to_vmem [thread:$0]  %s589_s2, 16, %s44_s15, [#allocation6]  }
  0x36   :  { %s416_s30 = scalar_lea.hbm %s590_s3, 16 }
  0x37   :  { %p417_p10 = scmp.ne.s32.totalorder %s590_s3, %s416_s30  ;;  %p420_p11 = scmp.lt.u32.totalorder %s416_s30, %s590_s3 }
  0x39   :  { %p422_p12 = pnand %p420_p11, %p417_p10 }
  0x3b   :  { %425 = shalt.err (!%p422_p12)
}
  0x3c   :  { %s426_s9 = scalar_lea.vmem %s54_s17, 16  ;;  %s430_s10 = scalar_lea.vmem %s54_s17, 32 }
  0x3d   :  { %p427_p13 = scmp.ne.s32.totalorder %s54_s17, %s426_s9  ;;  %p431_p0 = scmp.lt.s32.totalorder %s54_s17, %s54_s17 }
  0x3e   :  { %p432_p1 = scmp.lt.s32.totalorder %s430_s10, %s426_s9 }
  0x40   :  { %p433_p2 = por %p432_p1, %p431_p0 }
  0x42   :  { %p434_p3 = pnand %p433_p2, %p427_p13 }
  0x44   :  { %437 = shalt.err (!%p434_p3)
}
  0x45   :  { %56 = dma.hbm_to_vmem [thread:$0]  %s590_s3, 16, %s54_s17, [#allocation9]  }
  0x46   :  { %460 = dma.done.wait [#allocation3], 256  }
  0x47   :  { %461 = vsyncadd [#allocation3], 4294967040 }
  0x48   :  { %462 = dma.done.wait [#allocation6], 528  }
  0x49   :  { %463 = vsyncadd [#allocation6], 4294966768 }
  0x4a   :  { %464 = dma.done.wait [#allocation9], 16  }
  0x4b   :  { %465 = vsyncadd [#allocation9], 4294967280  ;;  %vm82_vm0 = vcmask 261120   ;;  %v71_v0 = vld [vmem:[#allocation5] sm:$0xff]  ;;  %v72_v1 = vld [vmem:[#allocation5 + $0x8] sm:$0xff]  ;;  %v183_v20 = vlaneseq  ;;  %vm193_vm1 = vcmask 1041409  }
  0x4c   :  { %v73_v2 = vld [vmem:[#allocation5 + $0x10] sm:$0xff]  ;;  %v322_v3 = vpack.c.bf16 %v72_v1, %v71_v0  ;;  %v74_v4 = vld [vmem:[#allocation5 + $0x18] sm:$0xff]  ;;  %v301_v8 = vld [vmem:[#allocation7] ss:$0 sm:$0xff]  ;;  %vm196_vm2 = vcmask 58368   ;;  %v474_v30 = vmov 0  }
  0x4d   :  { %v556_v5 = vld [vmem:[#allocation2] sm:$0xff]  ;;  %v326_v6 = vpack.c.bf16 %v74_v4, %v73_v2  ;;  %v560_v7 = vld [vmem:[#allocation2 + $0x8] sm:$0xff]  ;;  %v304_v13 = vld [vmem:[#allocation8] ss:$0 sm:$0xff]  ;;  %v184_v21 = vand.u32 127, %v183_v20  ;;  %v186_v22 = vshrl.u32 %v183_v20, 7  ;;  %339 = vset.pattern.permute.xlu0 %v474_v30  ;;  %338 = vset.pattern.permute.xlu1 %v474_v30 }
  0x4e   :  { %319 = vmatprep.mubr.msk.f32.mxu0 %vm82_vm0, %v556_v5  ;;  %323 = vmatprep.subr.bf16.mxu0 %v322_v3  ;;  %s475_s3 = smov [#allocation10]   ;;  %vm282_vm3 = vcmask 254976  }
  0x4f   :  { %325 = vmatpush3.bf16.msra.mxu0 %v322_v3  ;;  %v187_v24 = vsub.s32 %v184_v21, %v186_v22  ;;  %v203_v31 = vsub.s32 0, %v186_v22  ;;  %v207_v32 = vsub.s32 1, %v186_v22  ;;  %s290_s12 = sshll.u32 %s475_s3, 4  ;;  %s291_s12 = int_to_ptr.vmem [resolvable:$true] %s290_s12 }
  0x50   :  { %327 = vmatprep.subr.bf16.mxu0 %v326_v6  ;;  %s438_s1 = scalar_lea.vmem %s291_s12, 32  ;;  %p443_p5 = scmp.lt.s32.totalorder %s291_s12, %s291_s12 }
  0x51   :  { %p439_p4 = scmp.ne.s32.totalorder %s291_s12, %s438_s1  ;;  %p444_p6 = scmp.lt.s32.totalorder %s438_s1, %s438_s1 }
  0x53   :  { %329 = vmatpush3.bf16.msra.mxu0 %v326_v6  ;;  %p445_p7 = por %p444_p6, %p443_p5 }
  0x55   :  { %p446_p8 = pnand %p445_p7, %p439_p4 }
  0x56   :  { %320 = vmatmul.mubr.msk.f32.vlgmr.msra.gmra.mrb[0].mxu0 %vm82_vm0, %v560_v7 }
 0x129   :  { %v321_v9 = vpop.f32.mrb[0].mxu0 }
 0x12a   :  { %v161_v10 = vadd.f32 %v321_v9, %v301_v8  ;;  %v155_v11 = vpop.f32.mrb[1].mxu0 }
 0x12b   :  { %v156_v12 = vadd.f32 %v301_v8, %v155_v11 }
 0x12c   :  { %340 = vtanh.f32 %v161_v10 }
 0x12d   :  { %342 = vtanh.f32 %v156_v12 }
 0x136   :  { %v341_v14 = vpop.eup %340 }
 0x137   :  { %v343_v15 = vpop.eup %342  ;;  %v174_v18 = vmul.f32 %v341_v14, %v304_v13 }
 0x138   :  { %v173_v16 = vmul.f32 %v343_v15, %v304_v13 }
 0x139   :  { %v178_v19 = vsel %vm82_vm0, %v174_v18, 0.0 }
 0x13a   :  { %v175_v17 = vsel %vm82_vm0, %v173_v16, 0.0 }
 0x13b   :  { %176 = vadd.xlane.f32.xlu0 %v175_v17 }
 0x13f   :  { %179 = vadd.xlane.f32.xlu0 %v178_v19 }
 0x1c8   :  { %v177_v23 = vpop.xlane.xlu0 %176 }
 0x1c9   :  { %v188_v26 = vrot.slane %v177_v23, %v187_v24 }
 0x1cc   :  { %v180_v25 = vpop.xlane.xlu0 %179 }
 0x1cd   :  { %v192_v27 = vrot.slane %v180_v25, %v187_v24 }
 0x1cf   :  { %v194_v28 = vsel %vm193_vm1, %v192_v27, %v188_v26 }
 0x1d0   :  { %v197_v29 = vsel %vm196_vm2, %v194_v28, -inf }
 0x1d1   :  { %198 = vmax.xlane.f32.xlu1 %v197_v29 }
 0x25e   :  { %v199_v33 = vpop.xlane.xlu1 %198 }
 0x25f   :  { %v204_v34 = vrot.slane %v199_v33, %v203_v31  ;;  %v208_v35 = vrot.slane %v199_v33, %v207_v32 }
 0x261   :  { %v211_v36 = vsub.f32 %v177_v23, %v204_v34  ;;  %v212_v37 = vsub.f32 %v180_v25, %v208_v35 }
 0x263   :  { %v213_v38 = vmul.f32 1.442695, %v211_v36  ;;  %v215_v39 = vmul.f32 1.442695, %v212_v37 }
 0x265   :  { %344 = vpow2.f32 %v213_v38 }
 0x266   :  { %346 = vpow2.f32 %v215_v39 }
 0x26f   :  { %v345_v40 = vpop.eup %344 }
 0x270   :  { %v347_v41 = vpop.eup %346  ;;  %220 = vperm.xlu1 %338, %v345_v40  }
 0x271   :  { %223 = vperm.xlu0 %339, %v347_v41  }
 0x2ef   :  { %v221_v42 = vpop.permute.xlu1 %220 }
 0x2f0   :  { %v224_v43 = vpop.permute.xlu0 %223  ;;  %v228_v44 = vrot.slane %v221_v42, %v187_v24 }
 0x2f1   :  { %v232_v45 = vrot.slane %v224_v43, %v187_v24 }
 0x2f3   :  { %v233_v46 = vsel %vm193_vm1, %v232_v45, %v228_v44 }
 0x2f4   :  { %v235_v47 = vsel %vm196_vm2, %v233_v46, 0.0 }
 0x2f5   :  { %236 = vadd.xlane.f32.xlu1 %v235_v47 }
 0x382   :  { %v237_v48 = vpop.xlane.xlu1 %236 }
 0x383   :  { %348 = vrcp.f32 %v237_v48 }
 0x38d   :  { %v349_v49 = vpop.eup %348 }
 0x38e   :  { %v243_v50 = vrot.slane %v349_v49, %v203_v31  ;;  %v247_v52 = vrot.slane %v349_v49, %v207_v32 }
 0x390   :  { %v250_v51 = vmul.f32 %v345_v40, %v243_v50  ;;  %v251_v53 = vmul.f32 %v347_v41, %v247_v52 }
 0x392   :  { %254 = vperm.xlu0 %339, %v250_v51  }
 0x396   :  { %259 = vperm.xlu0 %339, %v251_v53  }
 0x411   :  { %v255_v54 = vpop.permute.xlu0 %254 }
 0x412   :  { %v262_v55 = vmul.f32 %v255_v54, %v556_v5 }
 0x414   :  { %v264_v56 = vsel %vm82_vm0, %v262_v55, 0.0 }
 0x415   :  { %v265_v57 = vrot.slane %v264_v56, 4  ;;  %v260_v58 = vpop.permute.xlu0 %259 }
 0x416   :  { %v263_v59 = vmul.f32 %v260_v58, %v560_v7 }
 0x417   :  { %v266_v60 = vadd.f32 %v265_v57, %v264_v56 }
 0x418   :  { %v271_v61 = vsel %vm82_vm0, %v263_v59, 0.0 }
 0x419   :  { %v267_v62 = vrot.slane %v266_v60, 2  ;;  %v272_v63 = vrot.slane %v271_v61, 4 }
 0x41b   :  { %v268_v0 = vadd.f32 %v267_v62, %v266_v60  ;;  %v273_v1 = vadd.f32 %v272_v63, %v271_v61 }
 0x41d   :  { %v274_v2 = vrot.slane %v273_v1, 2  ;;  %v269_v3 = vrot.slane %v268_v0, 1 }
 0x41f   :  { %v275_v4 = vadd.f32 %v274_v2, %v273_v1  ;;  %v270_v5 = vadd.f32 %v269_v3, %v268_v0 }
 0x421   :  { %v276_v6 = vrot.slane %v275_v4, 1 }
 0x423   :  { %v277_v8 = vadd.f32 %v276_v6, %v275_v4 }
 0x425   :  { %v280_v9 = vsel %vm193_vm1, %v277_v8, %v270_v5 }
 0x426   :  { %283 = vst.msk [vmem:[#allocation10] sm:$0x3] %vm282_vm3, %v280_v9 }
 0x427   :  { %449 = shalt.err (!%p446_p8)
}
 0x428   :  { %s450_s15 = scalar_lea.hbm %s591_s4, 32 }
 0x429   :  { %p451_p9 = scmp.ne.s32.totalorder %s591_s4, %s450_s15  ;;  %p454_p10 = scmp.lt.u32.totalorder %s450_s15, %s591_s4 }
 0x42b   :  { %p456_p11 = pnand %p454_p10, %p451_p9 }
 0x42d   :  { %459 = shalt.err (!%p456_p11)
}
 0x42e   :  { %293 = dma.vmem_to_hbm [thread:$0]  %s291_s12, 32, %s591_s4, [#allocation4]  }
 0x42f   :  { %466 = dma.done.wait [#allocation4], 32  }
 0x430   :  { %467 = vsyncadd [#allocation4], 4294967264 }
 0x431   :  { %297 = vsyncpa [#allocation3], 1 }
 0x432   :  { %298 = vsyncpa [#allocation6], 1 }
 0x433   :  { %299 = vsyncpa [#allocation9], 1 }
 0x434   :  { %300 = vsyncpa [#allocation4], 1 }

</bundles_post_ra>
